<compile_context>
chip_gen: v7x
topology: tpu7x:2x2x1
jax: 0.10.0
libtpu: 0.0.40
codegen_flags: <defaults>
</compile_context>

<pallas_src>
import jax
import jax.numpy as jnp
from jax.experimental import pallas as pl
from jax.experimental.pallas import tpu as pltpu

IN_DIM, HID_DIM, OUT_DIM = 1024, 512, 10
OUT_PAD = 128  # lane-dense padded output width (multiple of 128)


def net_kernel(x_ref, y_ref, w12_ref, beff_ref, o_ref):
    # Single fused affine map: relu( (x + y) @ W12 + b_eff )
    s = (x_ref[...] + y_ref[...]).astype(w12_ref.dtype)       # (B, 1024) bf16
    out = jnp.dot(s, w12_ref[...],
                  preferred_element_type=jnp.float32) + beff_ref[...]
    o_ref[...] = jnp.maximum(out, 0.0).astype(o_ref.dtype)


def prepare_params(w1, b1, w2, b2):
    """One-time parameter prep (do NOT redo per forward call).

    Collapses the two linears into a single affine map (valid because there is
    no nonlinearity between them):
        W12   = W1 @ W2_pad                      (f32 matmul, then cast bf16)
        b_eff = (2*b1 + 4) @ W2_pad + b2_pad     (kept f32)
    W2/b2 are zero-padded 10 -> 128 output columns for a lane-dense store;
    relu(0) = 0 in the padded lanes so the wrapper's [:, :10] slice is exact.
    """
    w2_pad = jnp.zeros((HID_DIM, OUT_PAD), jnp.float32).at[:, :OUT_DIM].set(w2)
    b2_pad = jnp.zeros((1, OUT_PAD), jnp.float32).at[:, :OUT_DIM].set(
        b2.reshape(1, OUT_DIM))
    b1_eff = (2.0 * b1 + 4.0).reshape(1, HID_DIM).astype(jnp.float32)

    w12 = (w1.astype(jnp.float32) @ w2_pad).astype(jnp.bfloat16)   # (1024, 128)
    b_eff = (b1_eff @ w2_pad + b2_pad).astype(jnp.float32)         # (1, 128)
    return w12, b_eff


def net_forward(x, y, w12, b_eff):
    batch = x.shape[0]
    vmem = pl.BlockSpec(memory_space=pltpu.MemorySpace.VMEM)
    cost = pl.CostEstimate(
        flops=2 * batch * IN_DIM * OUT_PAD,       # single collapsed GEMM
        transcendentals=0,
        bytes_accessed=(
            2 * batch * IN_DIM * 4                # x, y (f32)
            + IN_DIM * OUT_PAD * 2                # W12 (bf16)
            + OUT_PAD * 4                         # b_eff (f32)
            + batch * OUT_PAD * 4                 # output (f32)
        ),
    )
    out_pad = pl.pallas_call(
        net_kernel,
        out_shape=jax.ShapeDtypeStruct((batch, OUT_PAD), jnp.float32),
        in_specs=[vmem] * 4,
        out_specs=vmem,
        cost_estimate=cost,
    )(x, y, w12, b_eff)
    return out_pad[:, :OUT_DIM]


def init_params(key):
    k1, k2, k3, k4 = jax.random.split(key, 4)
    # deterministic synthetic init (uniform, roughly PyTorch default scale)
    w1 = jax.random.uniform(k1, (IN_DIM, HID_DIM), jnp.float32,
                            minval=-1.0, maxval=1.0) * (1.0 / jnp.sqrt(IN_DIM))
    b1 = jax.random.uniform(k2, (1, HID_DIM), jnp.float32,
                            minval=-1.0, maxval=1.0) * (1.0 / jnp.sqrt(IN_DIM))
    w2 = jax.random.uniform(k3, (HID_DIM, OUT_DIM), jnp.float32,
                            minval=-1.0, maxval=1.0) * (1.0 / jnp.sqrt(HID_DIM))
    b2 = jax.random.uniform(k4, (1, OUT_DIM), jnp.float32,
                            minval=-1.0, maxval=1.0) * (1.0 / jnp.sqrt(HID_DIM))
    return w1, b1, w2, b2


def reference_forward(x, y, w1, b1, w2, b2):
    # Unfused f32 reference, exactly mirroring the PyTorch module.
    x_out = x @ w1 + b1 + 2.0
    y_out = y @ w1 + b1
    out = x_out + 2.0 + y_out
    out = out @ w2 + b2
    return jnp.maximum(out, 0.0)


if __name__ == "__main__":
    key = jax.random.PRNGKey(0)
    kx, ky, kp = jax.random.split(key, 3)

    # inputs match the module: x, y of shape (1, 1024)
    x = jax.random.normal(kx, (1, 1024), jnp.float32)
    y = jax.random.normal(ky, (1, 1024), jnp.float32)
    w1, b1, w2, b2 = init_params(kp)

    params = prepare_params(w1, b1, w2, b2)
    out = net_forward(x, y, *params)
    out = jax.block_until_ready(out)

    ref = reference_forward(x, y, w1, b1, w2, b2)
    assert out.shape == (1, 10)
    # Single bf16 rounding of the collapsed weight + bf16 activations on the
    # MXU (f32 accumulation); tighter than the previous two-GEMM bf16 path.
    assert jnp.allclose(out, ref, atol=2e-2, rtol=2e-2), "mismatch vs JAX reference"

    print("KERNEL_OK")
</pallas_src>

<mosaic_0001>
module attributes {stable_mosaic.version = 11 : i64} {
  func.func @net_kernel(%arg0: memref<1x1024xf32, #tpu.memory_space<vmem>>, %arg1: memref<1x1024xf32, #tpu.memory_space<vmem>>, %arg2: memref<1024x128xbf16, #tpu.memory_space<vmem>>, %arg3: memref<1x128xf32, #tpu.memory_space<vmem>>, %arg4: memref<1x128xf32, #tpu.memory_space<vmem>>) attributes {dimension_semantics = [], scalar_prefetch = 0 : i64, scratch_operands = 0 : i64, tpu.core_type = #tpu.core_type<tc>} {
    %c0 = arith.constant 0 : index
    %c0_0 = arith.constant 0 : index
    %0 = vector.load %arg0[%c0, %c0_0] : memref<1x1024xf32, #tpu.memory_space<vmem>>, vector<1x1024xf32>
    %c0_1 = arith.constant 0 : index
    %c0_2 = arith.constant 0 : index
    %1 = vector.load %arg1[%c0_1, %c0_2] : memref<1x1024xf32, #tpu.memory_space<vmem>>, vector<1x1024xf32>
    %2 = arith.addf %0, %1 : vector<1x1024xf32>
    %3 = arith.truncf %2 : vector<1x1024xf32> to vector<1x1024xbf16>
    %c0_3 = arith.constant 0 : index
    %c0_4 = arith.constant 0 : index
    %4 = vector.load %arg2[%c0_3, %c0_4] : memref<1024x128xbf16, #tpu.memory_space<vmem>>, vector<1024x128xbf16>
    %cst = arith.constant dense<0.000000e+00> : vector<1x128xf32>
    %5 = tpu.matmul %3, %4, %cst {dimension_numbers = #tpu.dot_dimension_numbers<[1], [0], [0], [1], [0, 0, 1, 1], [], []>} : vector<1x1024xbf16>, vector<1024x128xbf16>, vector<1x128xf32> -> vector<1x128xf32>
    %c0_5 = arith.constant 0 : index
    %c0_6 = arith.constant 0 : index
    %6 = vector.load %arg3[%c0_5, %c0_6] : memref<1x128xf32, #tpu.memory_space<vmem>>, vector<1x128xf32>
    %7 = arith.addf %5, %6 : vector<1x128xf32>
    %cst_7 = arith.constant 0.000000e+00 : f32
    %8 = vector.broadcast %cst_7 : f32 to vector<1x128xf32>
    %9 = arith.maximumf %7, %8 : vector<1x128xf32>
    %c0_8 = arith.constant 0 : index
    %c0_9 = arith.constant 0 : index
    %10 = vector.load %arg4[%c0_8, %c0_9] : memref<1x128xf32, #tpu.memory_space<vmem>>, vector<1x128xf32>
    tpu.vector_store %arg4[%c0_8, %c0_9], %9 {strides = array<i32>} : memref<1x128xf32, #tpu.memory_space<vmem>>, vector<1x128xf32>,
    return
  }
}

</mosaic_0001>

<bundles_post_ra>
// kernel: tpu_custom_call.1
= control target key start
LH: loop header
LB: loop body
LE: loop exit
PB: predicated region body
PF: predicated region fallthrough
CT: control target
= control target key end

     0   :  { %9 = vsyncpa [#allocation3], 0  ;;  %s1217_s0 = inlined_call_operand.hbm [shape: f32[1,1024], index: 0, kind: input, shape index: {}]   ;;  %s1218_s1 = inlined_call_operand.hbm [shape: f32[1,1024], index: 1, kind: input, shape index: {}]   ;;  %s1219_s2 = inlined_call_operand.hbm [shape: bf16[1024,128], index: 2, kind: input, shape index: {}]   ;;  %s1220_s3 = inlined_call_operand.vmem [shape: f32[1,128], index: 3, kind: input, shape index: {}]   ;;  %s1221_s4 = inlined_call_operand.hbm [shape: f32[1,128], index: 4, kind: output, shape index: {}]  }
   0x1   :  { %10 = vsyncpa [#allocation6], 0 }
   0x2   :  { %11 = vsyncpa [#allocation4], 0  ;;  %s1115_s15 = smov [#allocation5]   ;;  %s1116_s17 = smov [#allocation2]  }
   0x3   :  { %s28_s16 = sshll.u32 %s1115_s15, 4  ;;  %s18_s18 = sshll.u32 %s1116_s17, 4  ;;  %s29_s16 = int_to_ptr.vmem [resolvable:$true] %s28_s16  ;;  %s19_s18 = int_to_ptr.vmem [resolvable:$true] %s18_s18 }
   0x4   :  { %s1021_s21 = scalar_lea.hbm %s1218_s1, 128 }
   0x5   :  { %p1022_p0 = scmp.ne.s32.totalorder %s1218_s1, %s1021_s21  ;;  %p1025_p1 = scmp.lt.u32.totalorder %s1021_s21, %s1218_s1 }
   0x7   :  { %p1027_p2 = pnand %p1025_p1, %p1022_p0 }
   0x9   :  { %1030 = shalt.err (!%p1027_p2)
}
   0xa   :  { %s1031_s26 = scalar_lea.vmem %s29_s16, 128  ;;  %p1036_p4 = scmp.lt.s32.totalorder %s29_s16, %s29_s16 }
   0xb   :  { %p1032_p3 = scmp.ne.s32.totalorder %s29_s16, %s1031_s26  ;;  %p1037_p5 = scmp.lt.s32.totalorder %s1031_s26, %s1031_s26 }
   0xd   :  { %p1038_p6 = por %p1037_p5, %p1036_p4 }
   0xf   :  { %p1039_p7 = pnand %p1038_p6, %p1032_p3 }
  0x11   :  { %1042 = shalt.err (!%p1039_p7)
}
  0x12   :  { %31 = dma.hbm_to_vmem [thread:$0]  %s1218_s1, 128, %s29_s16, [#allocation6]  }
  0x13   :  { %s1043_s5 = scalar_lea.hbm %s1217_s0, 128 }
  0x14   :  { %p1044_p8 = scmp.ne.s32.totalorder %s1217_s0, %s1043_s5  ;;  %p1047_p9 = scmp.lt.u32.totalorder %s1043_s5, %s1217_s0 }
  0x16   :  { %p1049_p10 = pnand %p1047_p9, %p1044_p8 }
  0x18   :  { %1052 = shalt.err (!%p1049_p10)
}
  0x19   :  { %s1053_s10 = scalar_lea.vmem %s19_s18, 128  ;;  %p1058_p12 = scmp.lt.s32.totalorder %s19_s18, %s19_s18 }
  0x1a   :  { %p1054_p11 = scmp.ne.s32.totalorder %s19_s18, %s1053_s10  ;;  %p1059_p13 = scmp.lt.s32.totalorder %s1053_s10, %s1053_s10 }
  0x1c   :  { %p1060_p0 = por %p1059_p13, %p1058_p12 }
  0x1e   :  { %p1061_p1 = pnand %p1060_p0, %p1054_p11 }
  0x20   :  { %1064 = shalt.err (!%p1061_p1)
}
  0x21   :  { %21 = dma.hbm_to_vmem [thread:$0]  %s1217_s0, 128, %s19_s18, [#allocation3]  }
  0x22   :  { %s1117_s12 = smov [#allocation7]   ;;  %s1065_s16 = scalar_lea.hbm %s1219_s2, 8192 }
  0x23   :  { %s37_s13 = sshll.u32 %s1117_s12, 4  ;;  %p1066_p2 = scmp.ne.s32.totalorder %s1219_s2, %s1065_s16  ;;  %s38_s13 = int_to_ptr.vmem [resolvable:$true] %s37_s13 }
  0x24   :  { %p1069_p3 = scmp.lt.u32.totalorder %s1065_s16, %s1219_s2 }
  0x26   :  { %p1071_p4 = pnand %p1069_p3, %p1066_p2 }
  0x28   :  { %1074 = shalt.err (!%p1071_p4)
}
  0x29   :  { %s1075_s22 = scalar_lea.vmem %s38_s13, 8192  ;;  %p1080_p6 = scmp.lt.s32.totalorder %s38_s13, %s38_s13 }
  0x2a   :  { %p1076_p5 = scmp.ne.s32.totalorder %s38_s13, %s1075_s22  ;;  %p1081_p7 = scmp.lt.s32.totalorder %s1075_s22, %s1075_s22 }
  0x2c   :  { %p1082_p8 = por %p1081_p7, %p1080_p6 }
  0x2e   :  { %p1083_p9 = pnand %p1082_p8, %p1076_p5 }
  0x30   :  { %1086 = shalt.err (!%p1083_p9)
}
  0x31   :  { %s1118_s0 = smov 64   ;;  %s1119_s18 = smov 4  }
  0x32   :  { %43 = dma.hbm_to_vmem [thread:$0]  %s1219_s2, 8192, %s38_s13, [#allocation6], %s1118_s0, %s1118_s0, %s1119_s18  }
  0x33   :  { %1109 = dma.done.wait [#allocation3], 128  }
  0x34   :  { %1110 = vsyncadd [#allocation3], 4294967168 }
  0x35   :  { %1111 = dma.done.wait [#allocation6], 8320  }
  0x36   :  { %1112 = vsyncadd [#allocation6], 4294958976  ;;  %v957_v0 = vld [vmem:[#allocation7 + $0x40] sm:$0xff]   ;;  %v961_v4 = vld [vmem:[#allocation7 + $0x48] sm:$0xff]   ;;  %v60_v21 = vlaneseq }
  0x37   :  { %v958_v1 = vld [vmem:[#allocation7 + $0xc0] sm:$0xff]   ;;  %863 = vmatprep.subr.bf16.mxu0 %v957_v0  ;;  %v962_v5 = vld [vmem:[#allocation7 + $0xc8] sm:$0xff]   ;;  %v965_v8 = vld [vmem:[#allocation7 + $0x50] sm:$0xff]  }
  0x38   :  { %v959_v2 = vld [vmem:[#allocation7] sm:$0xff]   ;;  %885 = vmatprep.subr.bf16.mxu1 %v958_v1  ;;  %v963_v6 = vld [vmem:[#allocation7 + $0x8] sm:$0xff]   ;;  %v966_v9 = vld [vmem:[#allocation7 + $0xd0] sm:$0xff]   ;;  %v1182_v26 = vshrl.u32 %v60_v21, 7 }
  0x39   :  { %v960_v3 = vld [vmem:[#allocation7 + $0x80] sm:$0xff]   ;;  %864 = vmatpush3.bf16.msra.mxu0 %v959_v2  ;;  %v964_v7 = vld [vmem:[#allocation7 + $0x88] sm:$0xff]   ;;  %v967_v10 = vld [vmem:[#allocation7 + $0x10] sm:$0xff]  }
  0x3a   :  { %886 = vmatpush3.bf16.msra.mxu1 %v960_v3  ;;  %865 = vmatprep.subr.bf16.mxu0 %v961_v4  ;;  %v968_v11 = vld [vmem:[#allocation7 + $0x90] sm:$0xff]   ;;  %v969_v12 = vld [vmem:[#allocation7 + $0x58] sm:$0xff]   ;;  %v973_v16 = vld [vmem:[#allocation7 + $0x60] sm:$0xff]   ;;  %v66_v31 = vsub.s32 1, %v1182_v26  ;;  %v74_v33 = vsub.s32 3, %v1182_v26  ;;  %v62_v35 = vsub.s32 0, %v1182_v26 }
  0x3b   :  { %887 = vmatprep.subr.bf16.mxu1 %v962_v5  ;;  %v970_v13 = vld [vmem:[#allocation7 + $0xd8] sm:$0xff]   ;;  %v974_v17 = vld [vmem:[#allocation7 + $0xe0] sm:$0xff]   ;;  %v977_v20 = vld [vmem:[#allocation7 + $0x68] sm:$0xff]   ;;  %v70_v37 = vsub.s32 2, %v1182_v26  ;;  %v82_v40 = vsub.s32 5, %v1182_v26  ;;  %v90_v41 = vsub.s32 7, %v1182_v26 }
  0x3c   :  { %v971_v14 = vld [vmem:[#allocation7 + $0x18] sm:$0xff]   ;;  %v975_v18 = vld [vmem:[#allocation7 + $0x20] sm:$0xff]   ;;  %v978_v22 = vld [vmem:[#allocation7 + $0xe8] sm:$0xff]  }
  0x3d   :  { %866 = vmatpush3.bf16.msra.mxu0 %v963_v6  ;;  %v972_v15 = vld [vmem:[#allocation7 + $0x98] sm:$0xff]   ;;  %v976_v19 = vld [vmem:[#allocation7 + $0xa0] sm:$0xff]   ;;  %v979_v23 = vld [vmem:[#allocation7 + $0x28] sm:$0xff]  }
  0x3e   :  { %888 = vmatpush3.bf16.msra.mxu1 %v964_v7  ;;  %867 = vmatprep.subr.bf16.mxu0 %v965_v8  ;;  %v980_v24 = vld [vmem:[#allocation7 + $0xa8] sm:$0xff]   ;;  %v981_v25 = vld [vmem:[#allocation7 + $0x70] sm:$0xff]   ;;  %v985_v30 = vld [vmem:[#allocation7 + $0x78] sm:$0xff]  }
  0x3f   :  { %889 = vmatprep.subr.bf16.mxu1 %v966_v9  ;;  %v982_v27 = vld [vmem:[#allocation7 + $0xf0] sm:$0xff]   ;;  %v986_v32 = vld [vmem:[#allocation7 + $0xf8] sm:$0xff]   ;;  %v989_v43 = vld [vmem:[#allocation7 + $0x140] sm:$0xff]  }
  0x40   :  { %v983_v28 = vld [vmem:[#allocation7 + $0x30] sm:$0xff]   ;;  %v987_v34 = vld [vmem:[#allocation7 + $0x38] sm:$0xff]   ;;  %v990_v44 = vld [vmem:[#allocation7 + $0x1c0] sm:$0xff]  }
  0x41   :  { %868 = vmatpush3.bf16.msra.mxu0 %v967_v10  ;;  %v984_v29 = vld [vmem:[#allocation7 + $0xb0] sm:$0xff]   ;;  %v988_v36 = vld [vmem:[#allocation7 + $0xb8] sm:$0xff]   ;;  %v991_v49 = vld [vmem:[#allocation7 + $0x100] sm:$0xff]  }
  0x42   :  { %890 = vmatpush3.bf16.msra.mxu1 %v968_v11  ;;  %869 = vmatprep.subr.bf16.mxu0 %v969_v12  ;;  %v56_v38 = vld [vmem:[#allocation2] sm:$0xff]  ;;  %v57_v39 = vld [vmem:[#allocation5] sm:$0xff]  ;;  %v992_v50 = vld [vmem:[#allocation7 + $0x180] sm:$0xff]  }
  0x43   :  { %891 = vmatprep.subr.bf16.mxu1 %v970_v13  ;;  %v1190_v42 = vadd.f32 %v57_v39, %v56_v38  ;;  %v993_v57 = vld [vmem:[#allocation7 + $0x148] sm:$0xff]   ;;  %v997_v63 = vld [vmem:[#allocation7 + $0x150] sm:$0xff]   ;;  %v1001_v3 = vld [vmem:[#allocation7 + $0x158] sm:$0xff]  }
  0x44   :  { %v994_v58 = vld [vmem:[#allocation7 + $0x1c8] sm:$0xff]   ;;  %v998_v0 = vld [vmem:[#allocation7 + $0x1d0] sm:$0xff]   ;;  %v1002_v4 = vld [vmem:[#allocation7 + $0x1d8] sm:$0xff]  }
  0x45   :  { %870 = vmatpush3.bf16.msra.mxu0 %v971_v14  ;;  %v67_v45 = vrot.slane %v1190_v42, %v66_v31  ;;  %v75_v46 = vrot.slane %v1190_v42, %v74_v33  ;;  %v63_v47 = vrot.slane %v1190_v42, %v62_v35  ;;  %v71_v48 = vrot.slane %v1190_v42, %v70_v37  ;;  %v995_v59 = vld [vmem:[#allocation7 + $0x108] sm:$0xff]   ;;  %v999_v1 = vld [vmem:[#allocation7 + $0x110] sm:$0xff]   ;;  %v1003_v5 = vld [vmem:[#allocation7 + $0x118] sm:$0xff]  }
  0x46   :  { %892 = vmatpush3.bf16.msra.mxu1 %v972_v15  ;;  %871 = vmatprep.subr.bf16.mxu0 %v973_v16  ;;  %v83_v51 = vrot.slane %v1190_v42, %v82_v40  ;;  %v91_v52 = vrot.slane %v1190_v42, %v90_v41  ;;  %v996_v62 = vld [vmem:[#allocation7 + $0x188] sm:$0xff]   ;;  %v1000_v2 = vld [vmem:[#allocation7 + $0x190] sm:$0xff]   ;;  %v1004_v6 = vld [vmem:[#allocation7 + $0x198] sm:$0xff]  }
  0x47   :  { %893 = vmatprep.subr.bf16.mxu1 %v974_v17  ;;  %v101_v53 = vpack.c.bf16 %v67_v45, %v67_v45  ;;  %v103_v54 = vpack.c.bf16 %v75_v46, %v75_v46  ;;  %v100_v55 = vpack.c.bf16 %v63_v47, %v63_v47  ;;  %v102_v56 = vpack.c.bf16 %v71_v48, %v71_v48  ;;  %v1005_v7 = vld [vmem:[#allocation7 + $0x160] sm:$0xff]   ;;  %v1009_v11 = vld [vmem:[#allocation7 + $0x168] sm:$0xff]   ;;  %v1013_v15 = vld [vmem:[#allocation7 + $0x170] sm:$0xff]  }
  0x48   :  { %v105_v60 = vpack.c.bf16 %v83_v51, %v83_v51  ;;  %v107_v61 = vpack.c.bf16 %v91_v52, %v91_v52  ;;  %v1006_v8 = vld [vmem:[#allocation7 + $0x1e0] sm:$0xff]   ;;  %v1010_v12 = vld [vmem:[#allocation7 + $0x1e8] sm:$0xff]   ;;  %v1014_v16 = vld [vmem:[#allocation7 + $0x1f0] sm:$0xff]  }
  0x49   :  { %872 = vmatpush3.bf16.msra.mxu0 %v975_v18  ;;  %653 = vmatprep.mubr.bf16.mxu0 %v101_v53  ;;  %v1007_v9 = vld [vmem:[#allocation7 + $0x120] sm:$0xff]   ;;  %v1011_v13 = vld [vmem:[#allocation7 + $0x128] sm:$0xff]   ;;  %v1015_v17 = vld [vmem:[#allocation7 + $0x130] sm:$0xff]   ;;  %v78_v18 = vsub.s32 4, %v1182_v26 }
  0x4a   :  { %894 = vmatpush3.bf16.msra.mxu1 %v976_v19  ;;  %873 = vmatprep.subr.bf16.mxu0 %v977_v20  ;;  %v1008_v10 = vld [vmem:[#allocation7 + $0x1a0] sm:$0xff]   ;;  %v1012_v14 = vld [vmem:[#allocation7 + $0x1a8] sm:$0xff]   ;;  %v1016_v19 = vld [vmem:[#allocation7 + $0x1b0] sm:$0xff]   ;;  %v86_v20 = vsub.s32 6, %v1182_v26 }
  0x4b   :  { %895 = vmatprep.subr.bf16.mxu1 %v978_v22  ;;  %693 = vmatprep.mubr.bf16.mxu1 %v103_v54  ;;  %v1017_v21 = vld [vmem:[#allocation7 + $0x178] sm:$0xff]   ;;  %v236_v31 = vld [vmem:[%s1220_s3] sm:$0x1]  ;;  %s1120_s3 = smov [#allocation8]  }
  0x4c   :  { %v1018_v22 = vld [vmem:[#allocation7 + $0x1f8] sm:$0xff]   ;;  %s789_s26 = sshll.u32 %s1120_s3, 4  ;;  %s790_s26 = int_to_ptr.vmem [resolvable:$true] %s789_s26 }
  0x4d   :  { %874 = vmatpush3.bf16.msra.mxu0 %v979_v23  ;;  %v79_v23 = vrot.slane %v1190_v42, %v78_v18  ;;  %s1087_s27 = scalar_lea.vmem %s790_s26, 16  ;;  %s1091_s28 = scalar_lea.vmem %s790_s26, 32 }
  0x4e   :  { %896 = vmatpush3.bf16.msra.mxu1 %v980_v24  ;;  %875 = vmatprep.subr.bf16.mxu0 %v981_v25  ;;  %v87_v24 = vrot.slane %v1190_v42, %v86_v20  ;;  %v1019_v25 = vld [vmem:[#allocation7 + $0x138] sm:$0xff]   ;;  %p1088_p10 = scmp.ne.s32.totalorder %s790_s26, %s1087_s27  ;;  %p1092_p11 = scmp.lt.s32.totalorder %s790_s26, %s790_s26 }
  0x4f   :  { %897 = vmatprep.subr.bf16.mxu1 %v982_v27  ;;  %v1020_v27 = vld [vmem:[#allocation7 + $0x1b8] sm:$0xff]   ;;  %p1093_p12 = scmp.lt.s32.totalorder %s1091_s28, %s1087_s27 }
  0x51   :  { %876 = vmatpush3.bf16.msra.mxu0 %v983_v28  ;;  %v104_v28 = vpack.c.bf16 %v79_v23, %v79_v23  ;;  %p1094_p13 = por %p1093_p12, %p1092_p11 }
  0x52   :  { %898 = vmatpush3.bf16.msra.mxu1 %v984_v29  ;;  %877 = vmatprep.subr.bf16.mxu0 %v985_v30  ;;  %v106_v29 = vpack.c.bf16 %v87_v24, %v87_v24 }
  0x53   :  { %899 = vmatprep.subr.bf16.mxu1 %v986_v32  ;;  %p1095_p0 = pnand %p1094_p13, %p1088_p10 }
  0x55   :  { %878 = vmatpush3.bf16.msra.mxu0 %v987_v34 }
  0x56   :  { %900 = vmatpush3.bf16.msra.mxu1 %v988_v36  ;;  %907 = vmatprep.subr.bf16.mxu0 %v989_v43 }
  0x57   :  { %929 = vmatprep.subr.bf16.mxu1 %v990_v44 }
  0x58   :  { %654 = vmatmul.mubr.bf16.vlgmr.msra.gmra.mrb[0].mxu0 %v100_v55 }
  0x59   :  { %694 = vmatmul.mubr.bf16.vlgmr.msra.gmra.mrb[0].mxu1 %v102_v56  ;;  %908 = vmatpush3.bf16.msra.mxu0 %v991_v49 }
  0x5a   :  { %930 = vmatpush3.bf16.msra.mxu1 %v992_v50  ;;  %909 = vmatprep.subr.bf16.mxu0 %v993_v57 }
  0x5b   :  { %931 = vmatprep.subr.bf16.mxu1 %v994_v58  ;;  %733 = vmatprep.mubr.bf16.mxu0 %v105_v60 }
  0x5c   :  { %773 = vmatprep.mubr.bf16.mxu1 %v107_v61 }
  0x5d   :  { %910 = vmatpush3.bf16.msra.mxu0 %v995_v59 }
  0x5e   :  { %932 = vmatpush3.bf16.msra.mxu1 %v996_v62  ;;  %911 = vmatprep.subr.bf16.mxu0 %v997_v63 }
  0x5f   :  { %933 = vmatprep.subr.bf16.mxu1 %v998_v0 }
  0x61   :  { %912 = vmatpush3.bf16.msra.mxu0 %v999_v1 }
  0x62   :  { %934 = vmatpush3.bf16.msra.mxu1 %v1000_v2  ;;  %913 = vmatprep.subr.bf16.mxu0 %v1001_v3 }
  0x63   :  { %935 = vmatprep.subr.bf16.mxu1 %v1002_v4 }
  0x65   :  { %914 = vmatpush3.bf16.msra.mxu0 %v1003_v5 }
  0x66   :  { %936 = vmatpush3.bf16.msra.mxu1 %v1004_v6  ;;  %915 = vmatprep.subr.bf16.mxu0 %v1005_v7 }
  0x67   :  { %937 = vmatprep.subr.bf16.mxu1 %v1006_v8 }
  0x69   :  { %916 = vmatpush3.bf16.msra.mxu0 %v1007_v9 }
  0x6a   :  { %938 = vmatpush3.bf16.msra.mxu1 %v1008_v10  ;;  %917 = vmatprep.subr.bf16.mxu0 %v1009_v11 }
  0x6b   :  { %939 = vmatprep.subr.bf16.mxu1 %v1010_v12 }
  0x6d   :  { %918 = vmatpush3.bf16.msra.mxu0 %v1011_v13 }
  0x6e   :  { %940 = vmatpush3.bf16.msra.mxu1 %v1012_v14  ;;  %919 = vmatprep.subr.bf16.mxu0 %v1013_v15 }
  0x6f   :  { %941 = vmatprep.subr.bf16.mxu1 %v1014_v16 }
  0x71   :  { %920 = vmatpush3.bf16.msra.mxu0 %v1015_v17 }
  0x72   :  { %942 = vmatpush3.bf16.msra.mxu1 %v1016_v19  ;;  %921 = vmatprep.subr.bf16.mxu0 %v1017_v21 }
  0x73   :  { %943 = vmatprep.subr.bf16.mxu1 %v1018_v22 }
  0x75   :  { %922 = vmatpush3.bf16.msra.mxu0 %v1019_v25 }
  0x76   :  { %944 = vmatpush3.bf16.msra.mxu1 %v1020_v27 }
  0x78   :  { %734 = vmatmul.mubr.bf16.vlgmr.msra.gmra.mrb[4].mxu0 %v104_v28 }
  0x79   :  { %774 = vmatmul.mubr.bf16.vlgmr.msra.gmra.mrb[4].mxu1 %v106_v29 }
 0x12b   :  { %v879_v26 = vpop.f32.mrb[0].mxu0 }
 0x12c   :  { %v901_v30 = vpop.f32.mrb[0].mxu1  ;;  %v880_v32 = vpop.f32.mrb[1].mxu0 }
 0x12d   :  { %v902_v33 = vpop.f32.mrb[1].mxu1  ;;  %v881_v34 = vadd.f32 %v880_v32, %v879_v26  ;;  %v882_v36 = vpop.f32.mrb[2].mxu0 }
 0x12e   :  { %v903_v35 = vadd.f32 %v902_v33, %v901_v30  ;;  %v904_v37 = vpop.f32.mrb[2].mxu1  ;;  %v883_v38 = vpop.f32.mrb[3].mxu0 }
 0x12f   :  { %v905_v39 = vpop.f32.mrb[3].mxu1  ;;  %v656_v40 = vadd.f32 %v881_v34, %v236_v31 }
 0x131   :  { %v696_v41 = vadd.f32 %v903_v35, %v656_v40 }
 0x14b   :  { %v923_v42 = vpop.f32.mrb[4].mxu0 }
 0x14c   :  { %v945_v43 = vpop.f32.mrb[4].mxu1  ;;  %v924_v44 = vpop.f32.mrb[5].mxu0 }
 0x14d   :  { %v946_v45 = vpop.f32.mrb[5].mxu1  ;;  %v925_v46 = vadd.f32 %v924_v44, %v923_v42  ;;  %v926_v48 = vpop.f32.mrb[6].mxu0 }
 0x14e   :  { %v947_v47 = vadd.f32 %v946_v45, %v945_v43  ;;  %v948_v49 = vpop.f32.mrb[6].mxu1  ;;  %v927_v50 = vpop.f32.mrb[7].mxu0 }
 0x14f   :  { %v949_v51 = vpop.f32.mrb[7].mxu1  ;;  %v736_v52 = vadd.f32 %v925_v46, %v696_v41 }
 0x151   :  { %v776_v53 = vadd.f32 %v947_v47, %v736_v52 }
 0x153   :  { %v781_v54 = vmax.f32 %v776_v53, 0.0 }
 0x155   :  { %782 = vst [vmem:[#allocation8] sm:$0x1] %v781_v54 }
 0x156   :  { %1098 = shalt.err (!%p1095_p0)
}
 0x157   :  { %s1099_s5 = scalar_lea.hbm %s1221_s4, 16 }
 0x158   :  { %p1100_p1 = scmp.ne.s32.totalorder %s1221_s4, %s1099_s5  ;;  %p1103_p2 = scmp.lt.u32.totalorder %s1099_s5, %s1221_s4 }
 0x15a   :  { %p1105_p3 = pnand %p1103_p2, %p1100_p1 }
 0x15c   :  { %1108 = shalt.err (!%p1105_p3)
}
 0x15d   :  { %792 = dma.vmem_to_hbm [thread:$0]  %s790_s26, 16, %s1221_s4, [#allocation4]  }
 0x15e   :  { %1113 = dma.done.wait [#allocation4], 16  }
 0x15f   :  { %1114 = vsyncadd [#allocation4], 4294967280 }
 0x160   :  { %796 = vsyncpa [#allocation3], 1 }
 0x161   :  { %797 = vsyncpa [#allocation6], 1 }
 0x162   :  { %798 = vsyncpa [#allocation4], 1 }

</bundles_post_ra>
